<compile_context>
chip_gen: v7x
topology: tpu7x:2x2x1
jax: 0.10.0
libtpu: 0.0.40
codegen_flags: <defaults>
</compile_context>

<pallas_src>
import math
import functools

import jax
import jax.numpy as jnp
from jax import lax
from jax.experimental import pallas as pl
from jax.experimental.pallas import tpu as pltpu


def get_padding_elem(L_in: int, stride: int, kernel_size: int, dilation: int):
    """Exact port of the PyTorch helper."""
    if stride > 1:
        n_steps = math.ceil((L_in - kernel_size * dilation) / stride + 1)
        L_out = stride * (n_steps - 1) + kernel_size * dilation
        padding = [kernel_size // 2, kernel_size // 2]
    else:
        L_out = (L_in - dilation * (kernel_size - 1) - 1) // stride + 1
        padding = [(L_in - L_out) // 2, (L_in - L_out) // 2]
    return padding


def _round_up(x: int, m: int) -> int:
    return ((x + m - 1) // m) * m


def _conv1d_kernel(x_ref, h_ref, w_ref, b_ref, o_ref, *, kernel_size, dilation):
    # x_ref: (1, C_in_p, TL)        bf16 current L tile
    # h_ref: (1, C_in_p, 128)       bf16 halo (first 128 cols of the next tile)
    # w_ref: (C_out_p, K*C_in_p)    bf16 folded (tap-major) weight
    # b_ref: (C_out_p, 1)           f32
    # o_ref: (1, C_out_p, TL)       f32
    TL = x_ref.shape[-1]
    xw = jnp.concatenate([x_ref[0], h_ref[0]], axis=-1)          # (C_in_p, TL+128)
    # im2col patch: fold K taps into the contraction dim -> one big MXU matmul.
    patch = jnp.concatenate(
        [xw[:, k * dilation:k * dilation + TL] for k in range(kernel_size)],
        axis=0)                                                  # (K*C_in_p, TL)
    acc = jnp.dot(w_ref[...], patch, preferred_element_type=jnp.float32)
    o_ref[0] = acc + b_ref[...]                                  # bias broadcast over TL


def conv1d(x, weight, bias, *, kernel_size, stride=1, dilation=1,
           padding="same", padding_mode="reflect", groups=1, tile_l=512):
    """Forward pass of speakerlab Conv1d.

    x:      (N, C_in, L_in)  float32
    weight: (C_out, C_in, K) float32  (PyTorch nn.Conv1d layout)
    bias:   (C_out,)         float32
    """
    assert groups == 1  # TODO(synk): grouped conv not implemented in this kernel
    assert stride == 1  # TODO(synk): stride > 1 would need strided in-kernel slicing
    N, C_in, L_in = x.shape
    C_out, C_in_w, K = weight.shape
    assert C_in_w == C_in and K == kernel_size

    # ---- padding glue (matches PyTorch forward exactly) ----
    if padding == "same":
        pad_l, pad_r = get_padding_elem(L_in, stride, kernel_size, dilation)
        x_pad = jnp.pad(x, ((0, 0), (0, 0), (pad_l, pad_r)), mode=padding_mode)
    elif padding == "causal":
        num_pad = (kernel_size - 1) * dilation
        x_pad = jnp.pad(x, ((0, 0), (0, 0), (num_pad, 0)), mode="constant")
    elif padding == "valid":
        x_pad = x
    else:
        raise ValueError("Padding must be 'same', 'valid' or 'causal'. Got " + padding)

    L_pad = x_pad.shape[-1]
    halo = dilation * (kernel_size - 1)
    L_out = (L_pad - halo - 1) // stride + 1
    assert halo <= 128  # TODO(synk): halo > 128 would need a wider halo block

    # ---- hardware-friendly tiling / channel padding ----
    TL = min(_round_up(tile_l, 128), _round_up(max(L_out, 1), 128))  # lane-dense tile
    m = TL // 128
    num_tiles = (L_out + TL - 1) // TL
    L_total = num_tiles * TL + 128          # room for the last tile's halo block
    C_in_p = _round_up(C_in, 16)            # bf16 sublane packing
    C_out_p = _round_up(C_out, 8)

    x_k = jnp.pad(x_pad, ((0, 0), (0, C_in_p - C_in), (0, L_total - L_pad)))
    x_k = x_k.astype(jnp.bfloat16)

    w_p = jnp.pad(weight, ((0, C_out_p - C_out), (0, C_in_p - C_in), (0, 0)))
    w2d = jnp.transpose(w_p, (0, 2, 1)).reshape(C_out_p, K * C_in_p)  # tap-major rows
    w2d = w2d.astype(jnp.bfloat16)
    b2d = jnp.pad(bias, (0, C_out_p - C_out)).reshape(C_out_p, 1).astype(jnp.float32)

    kernel = functools.partial(_conv1d_kernel,
                               kernel_size=kernel_size, dilation=dilation)

    out_full = pl.pallas_call(
        kernel,
        out_shape=jax.ShapeDtypeStruct((N, C_out_p, num_tiles * TL), jnp.float32),
        grid_spec=pltpu.PrefetchScalarGridSpec(
            num_scalar_prefetch=0,
            grid=(N, num_tiles),
            in_specs=[
                # current L tile
                pl.BlockSpec((1, C_in_p, TL), lambda n, l: (n, 0, l)),
                # halo: first 128 columns of the next tile (same array, shifted view)
                pl.BlockSpec((1, C_in_p, 128), lambda n, l: (n, 0, (l + 1) * m)),
                # folded weight + bias, resident across the grid
                pl.BlockSpec((C_out_p, K * C_in_p), lambda n, l: (0, 0)),
                pl.BlockSpec((C_out_p, 1), lambda n, l: (0, 0)),
            ],
            out_specs=pl.BlockSpec((1, C_out_p, TL), lambda n, l: (n, 0, l)),
        ),
        compiler_params=pltpu.CompilerParams(
            dimension_semantics=("parallel", "parallel"),
            vmem_limit_bytes=48 * 1024 * 1024),
    )(x_k, x_k, w2d, b2d)

    # strip channel / length padding
    return out_full[:, :C_out, :L_out]


if __name__ == "__main__":
    # Module config: Conv1d(out_channels=8, kernel_size=3, in_channels=4)
    N, C_in, C_out, L_in, K = 2, 4, 8, 16, 3
    stride, dilation = 1, 1

    key = jax.random.PRNGKey(0)
    kx, kw, kb = jax.random.split(key, 3)
    x = jax.random.normal(kx, (N, C_in, L_in), dtype=jnp.float32)
    bound = 1.0 / math.sqrt(C_in * K)
    weight = jax.random.uniform(kw, (C_out, C_in, K), minval=-bound, maxval=bound,
                                dtype=jnp.float32)
    bias = jax.random.uniform(kb, (C_out,), minval=-bound, maxval=bound,
                              dtype=jnp.float32)

    out = conv1d(x, weight, bias, kernel_size=K, stride=stride,
                 dilation=dilation, padding="same", padding_mode="reflect")
    out = jax.block_until_ready(out)

    # correctness check against a pure-JAX reference with bf16-rounded operands
    # (kernel computes bf16 x bf16 with f32 accumulation)
    x_bf = x.astype(jnp.bfloat16).astype(jnp.float32)
    w_bf = weight.astype(jnp.bfloat16).astype(jnp.float32)
    pad_l, pad_r = get_padding_elem(L_in, stride, K, dilation)
    x_ref_pad = jnp.pad(x_bf, ((0, 0), (0, 0), (pad_l, pad_r)), mode="reflect")
    ref = lax.conv_general_dilated(
        x_ref_pad, w_bf, window_strides=(stride,), padding="VALID",
        rhs_dilation=(dilation,), dimension_numbers=("NCH", "OIH", "NCH"),
        precision=lax.Precision.HIGHEST) + bias.reshape(1, -1, 1)

    assert out.shape == ref.shape == (N, C_out, L_in), (out.shape, ref.shape)
    assert jnp.allclose(out, ref, atol=1e-4, rtol=1e-4)

    print("KERNEL_OK")
</pallas_src>

<mosaic_0001>
module attributes {stable_mosaic.version = 11 : i64} {
  func.func @_conv1d_kernel(%arg0: i32, %arg1: i32, %arg2: memref<1x16x128xbf16, #tpu.memory_space<vmem>>, %arg3: memref<1x16x128xbf16, #tpu.memory_space<vmem>>, %arg4: memref<8x48xbf16, #tpu.memory_space<vmem>>, %arg5: memref<8x1xf32, #tpu.memory_space<vmem>>, %arg6: memref<1x8x128xf32, #tpu.memory_space<vmem>>) attributes {dimension_semantics = [#tpu.dimension_semantics<parallel>, #tpu.dimension_semantics<parallel>], iteration_bounds = array<i64: 2, 1>, scalar_prefetch = 0 : i64, scratch_operands = 0 : i64, tpu.core_type = #tpu.core_type<tc>, window_params = [{transform_indices = @transform_0, window_bounds = array<i64: 1, 16, 128>}, {transform_indices = @transform_1, window_bounds = array<i64: 1, 16, 128>}, {pipeline_mode = #tpu.pipeline_mode<synchronous>, transform_indices = @transform_2, window_bounds = array<i64: 8, 48>}, {pipeline_mode = #tpu.pipeline_mode<synchronous>, transform_indices = @transform_3, window_bounds = array<i64: 8, 1>}, {transform_indices = @transform_4, window_bounds = array<i64: 1, 8, 128>}]} {
    %c0 = arith.constant 0 : index
    %c0_0 = arith.constant 0 : index
    %c0_1 = arith.constant 0 : index
    %0 = vector.load %arg2[%c0, %c0_0, %c0_1] : memref<1x16x128xbf16, #tpu.memory_space<vmem>>, vector<1x16x128xbf16>
    %1 = vector.shape_cast %0 : vector<1x16x128xbf16> to vector<16x128xbf16>
    %c0_2 = arith.constant 0 : index
    %c0_3 = arith.constant 0 : index
    %c0_4 = arith.constant 0 : index
    %2 = vector.load %arg3[%c0_2, %c0_3, %c0_4] : memref<1x16x128xbf16, #tpu.memory_space<vmem>>, vector<1x16x128xbf16>
    %3 = vector.shape_cast %2 : vector<1x16x128xbf16> to vector<16x128xbf16>
    %4 = tpu.concatenate %1, %3 in 1 : vector<16x128xbf16>, vector<16x128xbf16> -> vector<16x256xbf16>
    %5 = vector.extract_strided_slice %4 {offsets = [0, 0], sizes = [16, 128], strides = [1, 1]} : vector<16x256xbf16> to vector<16x128xbf16>
    %6 = vector.extract_strided_slice %4 {offsets = [0, 1], sizes = [16, 128], strides = [1, 1]} : vector<16x256xbf16> to vector<16x128xbf16>
    %7 = vector.extract_strided_slice %4 {offsets = [0, 2], sizes = [16, 128], strides = [1, 1]} : vector<16x256xbf16> to vector<16x128xbf16>
    %8 = tpu.concatenate %5, %6, %7 in 0 : vector<16x128xbf16>, vector<16x128xbf16>, vector<16x128xbf16> -> vector<48x128xbf16>
    %c0_5 = arith.constant 0 : index
    %c0_6 = arith.constant 0 : index
    %9 = vector.load %arg4[%c0_5, %c0_6] : memref<8x48xbf16, #tpu.memory_space<vmem>>, vector<8x48xbf16>
    %cst = arith.constant dense<0.000000e+00> : vector<8x128xf32>
    %10 = tpu.matmul %9, %8, %cst {dimension_numbers = #tpu.dot_dimension_numbers<[1], [0], [0], [1], [0, 0, 1, 1], [], []>} : vector<8x48xbf16>, vector<48x128xbf16>, vector<8x128xf32> -> vector<8x128xf32>
    %c0_7 = arith.constant 0 : index
    %c0_8 = arith.constant 0 : index
    %11 = vector.load %arg5[%c0_7, %c0_8] : memref<8x1xf32, #tpu.memory_space<vmem>>, vector<8x1xf32>
    %12 = vector.broadcast %11 : vector<8x1xf32> to vector<8x128xf32>
    %13 = arith.addf %10, %12 : vector<8x128xf32>
    %c0_9 = arith.constant 0 : index
    %c0_10 = arith.constant 0 : index
    %c0_11 = arith.constant 0 : index
    %14 = vector.load %arg6[%c0_9, %c0_10, %c0_11] : memref<1x8x128xf32, #tpu.memory_space<vmem>>, vector<1x8x128xf32>
    %15 = vector.shape_cast %14 : vector<1x8x128xf32> to vector<8x128xf32>
    %16 = vector.shape_cast %13 : vector<8x128xf32> to vector<1x8x128xf32>
    tpu.vector_store %arg6[%c0_9, %c0_10, %c0_11], %16 {strides = array<i32>} : memref<1x8x128xf32, #tpu.memory_space<vmem>>, vector<1x8x128xf32>,
    return
  }
  func.func @transform_0(%arg0: i32, %arg1: i32) -> (i32, i32, i32) {
    %c0_i32 = arith.constant 0 : i32
    %c0_i32_0 = arith.constant 0 : i32
    return %arg0, %c0_i32, %arg1 : i32, i32, i32
  }
  func.func @transform_1(%arg0: i32, %arg1: i32) -> (i32, i32, i32) {
    %c1_i32 = arith.constant 1 : i32
    %0 = arith.addi %arg1, %c1_i32 : i32
    %c1_i32_0 = arith.constant 1 : i32
    %1 = arith.muli %0, %c1_i32_0 : i32
    %c0_i32 = arith.constant 0 : i32
    %c0_i32_1 = arith.constant 0 : i32
    return %arg0, %c0_i32, %1 : i32, i32, i32
  }
  func.func @transform_2(%arg0: i32, %arg1: i32) -> (i32, i32) {
    %c0_i32 = arith.constant 0 : i32
    %c0_i32_0 = arith.constant 0 : i32
    %c0_i32_1 = arith.constant 0 : i32
    return %c0_i32, %c0_i32_0 : i32, i32
  }
  func.func @transform_3(%arg0: i32, %arg1: i32) -> (i32, i32) {
    %c0_i32 = arith.constant 0 : i32
    %c0_i32_0 = arith.constant 0 : i32
    %c0_i32_1 = arith.constant 0 : i32
    return %c0_i32, %c0_i32_0 : i32, i32
  }
  func.func @transform_4(%arg0: i32, %arg1: i32) -> (i32, i32, i32) {
    %c0_i32 = arith.constant 0 : i32
    %c0_i32_0 = arith.constant 0 : i32
    return %arg0, %c0_i32, %arg1 : i32, i32, i32
  }
}

</mosaic_0001>

<bundles_post_ra>
// kernel: tpu_custom_call.1
= control target key start
LH: loop header
LB: loop body
LE: loop exit
PB: predicated region body
PF: predicated region fallthrough
CT: control target
= control target key end

     0   :  { %s1026_s0 = inlined_call_operand.hbm [shape: bf16[2,16,256], index: 0, kind: input, shape index: {}]   ;;  %s1027_s1 = inlined_call_operand.hbm [shape: bf16[2,16,256], index: 1, kind: input, shape index: {}]   ;;  %s1028_s2 = inlined_call_operand.vmem [shape: bf16[8,48], index: 2, kind: input, shape index: {}]   ;;  %s1029_s3 = inlined_call_operand.vmem [shape: f32[8,1], index: 3, kind: input, shape index: {}]   ;;  %s1030_s4 = inlined_call_operand.hbm [shape: f32[2,8,128], index: 4, kind: output, shape index: {}]  }
   0x1   :  { %1035 = sst [smem:[#allocation12_spill]] %s1026_s0 }
   0x2   :  { %9 = vsyncpa [#allocation3], 0 }
   0x3   :  { %11 = vsyncpa [#allocation3 + $0x1], 0 }
   0x4   :  { %12 = vsyncpa [#allocation6], 0 }
   0x5   :  { %14 = vsyncpa [#allocation6 + $0x1], 0 }
   0x6   :  { %15 = vsyncpa [#allocation4], 0 }
   0x7   :  { %17 = vsyncpa [#allocation4 + $0x1], 0  ;;  %s784_s15 = smov 0   ;;  %s786_s16 = smov 0  }
   0x8   :  { %s788_s17 = smov 0   ;;  %s790_s18 = smov 0  }
   0x9   :  { %s792_s19 = smov 0   ;;  %s794_s20 = smov 0  }
   0xa LB: > { %s484_s21 = sadd.s32 4294967295, %s746_s20   ;;  %s485_s22 = sadd.s32 4294967294, %s746_s20   ;;  %s746_s20 = sphi %s794_s20, %s23_s20   ;;  %s742_s19 = sphi %s792_s19, %s1054_s19   ;;  %s738_s18 = sphi %s790_s18, %s1053_s18   ;;  %s734_s17 = sphi %s788_s17, %s1052_s17   ;;  %s730_s16 = sphi %s786_s16, %s1051_s16   ;;  %s726_s15 = sphi %s784_s15, %s1050_s15  }
   0xb   : > { %s35_s23 = sadd.s32 1, %s742_s19  ;;  %s44_s24 = sadd.s32 1, %s734_s17 }
   0xc   : > { %p37_p0 = scmp.ge.s32.totalorder %s35_s23, 2  ;;  %p51_p1 = scmp.ne.s32.totalorder %s734_s17, %s730_s16 }
   0xd   : > { %p52_p2 = scmp.eq.s32.totalorder %s746_s20, 0  ;;  %p57_p3 = scmp.ne.s32.totalorder %s730_s16, %s726_s15 }
   0xe   : > { %s1056_s23 = smov (%p37_p0, %s35_s23), 0  ;;  %p58_p5 = scmp.eq.s32.totalorder %s484_s21, 0 }
   0xf   : > { %1036 = sst [smem:[#allocation11_spill]] %s1056_s23  ;;  %p825_p4 = por %p52_p2, %p51_p1 }
  0x10   : > { %s39_s26 = ssub.s32 %s742_s19, %s1056_s23  ;;  %p155_p6 = scmp.eq.s32.totalorder %s484_s21, 1 }
  0x11   : > { %p42_p7 = scmp.eq.s32.totalorder %s39_s26, 0  ;;  %p831_p8 = por %p58_p5, %p57_p3 }
  0x12   : > { %p835_p9 = por %p155_p6, %p51_p1  ;;  %p161_p10 = scmp.eq.s32.totalorder %s485_s22, 1 }
  0x13   : > { %s1038_s27 = scalar_select %p831_p8, 1, 0 }
  0x14   : > { %s1039_s28 = scalar_select %p835_p9, 1, 0 }
  0x15   : > { %s840_s29 = scalar_select %p42_p7, %s734_s17, %s44_s24  }
  0x16   : > { %p842_p11 = por %p161_p10, %p57_p3  ;;  %p538_p13 = scmp.lt.s32.totalorder %s746_s20, 2 }
  0x17   : > { %s849_s5 = sand.u32 1, %s734_s17   ;;  %s505_s7 = sshll.u32 %s742_s19, 8 }
  0x18   : > { %s1040_s30 = scalar_select %p842_p11, 1, 0 }
  0x19   : > { %s488_s6 = sshll.u32 %s849_s5, 3  ;;  %s1041_s0 = sld [smem:[#allocation12_spill]] }
  0x1a   : > { %s191_s11 = scalar_lea.vmem [#allocation2], %s488_s6  ;;  %p866_p0 = pnand %p538_p13, %p825_p4 }
  0x1b   : > { %s199_s12 = sshll.u32 %s191_s11, 4  ;;  %s188_s14 = scalar_lea.sflag [#allocation3], %s849_s5  ;;  %s862_s12 = int_to_ptr.vmem [resolvable:$true] %s199_s12 }
  0x1c   : > { %p601_p2 = pneg %p866_p0 }
  0x1f   : > { %s858_s10 = scalar_lea.hbm %s1041_s0, %s505_s7  ;;  %s604_s26 = scalar_lea.hbm %s1041_s0, 512 }
  0x20   : > { %s599_s21 = scalar_lea.hbm %s858_s10, 128  ;;  %p605_p4 = scmp.lt.u32.totalorder %s858_s10, %s1041_s0 }
  0x21   : > { %p600_p1 = scmp.ne.s32.totalorder %s858_s10, %s599_s21  ;;  %p606_p6 = scmp.lt.u32.totalorder %s604_s26, %s599_s21 }
  0x22   : > { %p608_p10 = scmp.lt.u32.totalorder %s599_s21, %s858_s10 }
  0x23   : > { %p602_p3 = pnand %p601_p2, %p600_p1  ;;  %p607_p7 = por %p606_p6, %p605_p4 }
  0x25   : > { %p603_p5 = pneg %p602_p3  ;;  %p609_p13 = por %p608_p10, %p607_p7 }
  0x27   : > { %p610_p12 = pnand %p609_p13, %p603_p5 }
  0x29   : > { %613 = shalt.err (!%p610_p12)
}
  0x2a   : > { %s614_s9 = scalar_lea.vmem %s862_s12, 128  ;;  %s748_s11 = smov [#allocation2]  }
  0x2b   : > { %p615_p1 = scmp.ne.s32.totalorder %s862_s12, %s614_s9  ;;  %s619_s22 = sshll.u32 %s748_s11, 4  ;;  %s620_s22 = int_to_ptr.vmem [resolvable:$false] %s619_s22 }
  0x2c   : > { %s621_s24 = scalar_lea.vmem %s620_s22, 256  ;;  %p622_p9 = scmp.lt.s32.totalorder %s862_s12, %s620_s22 }
  0x2d   : > { %p617_p3 = pnand %p615_p1, %p601_p2  ;;  %p623_p4 = scmp.lt.s32.totalorder %s621_s24, %s614_s9 }
  0x2f   : > { %p618_p11 = pneg %p617_p3  ;;  %p624_p6 = por %p623_p4, %p622_p9 }
  0x31   : > { %p625_p7 = pnand %p624_p6, %p618_p11 }
  0x33   : > { %628 = shalt.err (!%p625_p7)
}
  0x34   : > { %s1033_s21 = smov 128   ;;  %s750_s26 = smov 64  }
  0x35   : > { %s751_s25 = smov 4   ;;  %p494_p9 = scmp.ge.s32.totalorder %s746_s20, 1 }
  0x36   : > { %530 = dma.hbm_to_vmem [thread:$0]  (!%p866_p0), %s858_s10, 128, %s862_s12, %s188_s14, %s1033_s21, %s750_s26, %s751_s25  }
  0x37   : > { %p230_p11 = scmp.lt.s32.totalorder %s746_s20, 3  ;;  %s417_s22 = scalar_lea.hbm %s1027_s1, %s505_s7 }
  0x38   : > { %s912_s24 = scalar_lea.hbm %s417_s22, 64  ;;  %s213_s0 = scalar_lea.vmem [#allocation5], %s488_s6 }
  0x39   : > { %p903_p12 = pnand %p494_p9, %p230_p11  ;;  %s222_s23 = sshll.u32 %s213_s0, 4  ;;  %s916_s23 = int_to_ptr.vmem [resolvable:$true] %s222_s23 }
  0x3a   : > { %s210_s10 = scalar_lea.sflag [#allocation6], %s849_s5  ;;  %s659_s12 = scalar_lea.hbm %s417_s22, 192 }
  0x3b   : > { %p630_p5 = scmp.ne.s32.totalorder %s912_s24, %s659_s12  ;;  %s634_s7 = scalar_lea.hbm %s1027_s1, 512 }
  0x3c   : > { %p635_p1 = scmp.lt.u32.totalorder %s912_s24, %s1027_s1  ;;  %p636_p3 = scmp.lt.u32.totalorder %s634_s7, %s659_s12 }
  0x3d   : > { %p632_p10 = pnand %p630_p5, %p601_p2  ;;  %p638_p6 = scmp.lt.u32.totalorder %s659_s12, %s912_s24 }
  0x3e   : > { %p637_p4 = por %p636_p3, %p635_p1 }
  0x3f   : > { %p633_p13 = pneg %p632_p10 }
  0x40   : > { %p639_p7 = por %p638_p6, %p637_p4 }
  0x42   : > { %p640_p9 = pnand %p639_p7, %p633_p13 }
  0x44   : > { %643 = shalt.err (!%p640_p9)
}
  0x45   : > { %s644_s0 = scalar_lea.vmem %s916_s23, 128  ;;  %s752_s6 = smov [#allocation5]  }
  0x46   : > { %p645_p11 = scmp.ne.s32.totalorder %s916_s23, %s644_s0  ;;  %s649_s22 = sshll.u32 %s752_s6, 4  ;;  %s650_s22 = int_to_ptr.vmem [resolvable:$false] %s649_s22 }
  0x47   : > { %s651_s21 = scalar_lea.vmem %s650_s22, 256  ;;  %p652_p8 = scmp.lt.s32.totalorder %s916_s23, %s650_s22 }
  0x48   : > { %p647_p5 = pnand %p645_p11, %p601_p2  ;;  %p653_p1 = scmp.lt.s32.totalorder %s651_s21, %s644_s0 }
  0x4a   : > { %p648_p10 = pneg %p647_p5  ;;  %p654_p3 = por %p653_p1, %p652_p8 }
  0x4c   : > { %p655_p4 = pnand %p654_p3, %p648_p10 }
  0x4e   : > { %658 = shalt.err (!%p655_p4)
}
  0x4f   : > { %s1044_s12 = smov 128   ;;  %234 = sbr.rel (%p903_p12) target bundleno = 446 (0x1be), region = 36 }
  0x50   : > { %533 = dma.hbm_to_vmem [thread:$0]  (!%p866_p0), %s912_s24, 128, %s916_s23, %s210_s10, %s1044_s12, %s750_s26, %s751_s25  }
  0x51   : > { %s949_s14 = sand.u32 (!%p903_p12), 1, %s730_s16   ;;  %p1045_p8 = scmp.ne.s32.totalorder (!%p903_p12), %s1038_s27, 0 }
  0x52   : > { %s952_s9 = sshll.u32 (!%p903_p12), %s949_s14, 3  ;;  %s237_s13 = scalar_lea.sflag (!%p903_p12), [#allocation3], %s949_s14 }
  0x53   : > { %s240_s7 = scalar_lea.vmem (!%p903_p12), [#allocation2], %s952_s9 }
  0x56   : > { %713 = dma.done.wait (%p1045_p8), %s237_s13, 128  }
  0x57   : > { %715 = vsyncadd (%p1045_p8), %s237_s13, 4294967168  ;;  %s246_s23 = scalar_lea.sflag [#allocation6], %s949_s14  ;;  %s249_s5 = scalar_lea.vmem [#allocation5], %s952_s9 }
  0x58   : > { %717 = dma.done.wait (%p1045_p8), %s246_s23, 128  }
  0x59   : > { %719 = vsyncadd (%p1045_p8), %s246_s23, 4294967168  ;;  %v753_v0 = vmov 0.0   ;;  %vm754_vm0 = vmmov 0   ;;  %v597_v1 = vld [vmem:[%s240_s7] sm:$0xff]   ;;  %s755_s26 = smov 126   ;;  %s756_s25 = smov 127  }
  0x5a   : > { %511 = vmatprep.subr.bf16.mxu0 %v753_v0  ;;  %517 = vmatprep.mubr.msk.bf16.mxu0 %vm754_vm0, %v753_v0  ;;  %v598_v2 = vld [vmem:[%s249_s5] sm:$0xff]   ;;  %v757_v3 = vmov 0   ;;  %v311_v4 = vld [vmem:[%s1029_s3] sm:$0xff]  ;;  %vm300_vm1 = vcmask 1039360   ;;  %vm307_vm2 = vcmask 1031168   ;;  %vm317_vm3 = vcmask 392192  }
  0x5b   : > { %303 = vrot.lane.b32.xlu1 %v597_v1, %s755_s26  ;;  %296 = vrot.lane.b32.xlu0 %v597_v1, %s756_s25  ;;  %v310_v11 = vld [vmem:[%s1028_s2] sm:$0xf]  ;;  %s502_s11 = sshll.u32 %s738_s18, 7  ;;  %s278_s0 = scalar_lea.vmem [#allocation7], %s952_s9 }
  0x5c   : > { %512 = vmatpush3.bf16.msra.mxu0 %v597_v1  ;;  %596 = vset.pattern.permute.xlu0 %v757_v3  ;;  %s377_s6 = sshll.u32 %s278_s0, 4  ;;  %s977_s12 = scalar_lea.hbm %s1030_s4, %s502_s11  ;;  %s979_s6 = int_to_ptr.vmem [resolvable:$true] %s377_s6 }
  0x5d   : > { %513 = vmatprep.subr.bf16.mxu0 %v753_v0  ;;  %s363_s13 = scalar_lea.sflag [#allocation4], %s949_s14  ;;  %s660_s18 = scalar_lea.vmem %s979_s6, 128 }
  0x5e   : > { %p661_p0 = scmp.ne.s32.totalorder %s979_s6, %s660_s18  ;;  %p1046_p2 = scmp.ne.s32.totalorder %s1039_s28, 0 }
  0x5f   : > { %305 = vrot.lane.b32.xlu1 %v598_v2, %s755_s26  ;;  %298 = vrot.lane.b32.xlu0 %v598_v2, %s756_s25  ;;  %s758_s9 = smov [#allocation7]  }
  0x60   : > { %p662_p12 = pnand %p661_p0, %p1046_p2  ;;  %s664_s7 = sshll.u32 %s758_s9, 4  ;;  %s665_s7 = int_to_ptr.vmem [resolvable:$false] %s664_s7 }
  0x61   : > { %s666_s23 = scalar_lea.vmem %s665_s7, 256  ;;  %p667_p6 = scmp.lt.s32.totalorder %s979_s6, %s665_s7 }
  0x62   : > { %p663_p13 = pneg %p662_p12  ;;  %p668_p7 = scmp.lt.s32.totalorder %s666_s23, %s660_s18 }
  0x63   : > { %314 = vperm.xlu0 %596, %v311_v4  }
  0x64   : > { %p669_p9 = por %p668_p7, %p667_p6 }
  0x66   : > { %p670_p11 = pnand %p669_p9, %p663_p13 }
  0xcd   : > { %v304_v5 = vpop.permute.xlu1 %303  ;;  %v297_v6 = vpop.permute.xlu0 %296 }
  0xd1   : > { %v299_v7 = vpop.permute.xlu0 %298  ;;  %v306_v9 = vpop.permute.xlu1 %305 }
  0xd2   : > { %v301_v8 = vsel %vm300_vm1, %v297_v6, %v299_v7  ;;  %v308_v10 = vsel %vm307_vm2, %v304_v5, %v306_v9 }
  0xd3   : > { %514 = vmatpush3.bf16.msra.mxu0 %v301_v8 }
  0xd4   : > { %515 = vmatprep.subr.bf16.mxu0 %v753_v0 }
  0xd7   : > { %516 = vmatpush3.bf16.msra.mxu0 %v308_v10 }
  0xda   : > { %518 = vmatmul.mubr.msk.bf16.vlgmr.msra.gmra.mrb[0].mxu0 %vm317_vm3, %v310_v11 }
  0xe2   : > { %v315_v12 = vpop.permute.xlu0 %314 }
 0x1ad   : > { %v355_v13 = vpop.f32.mrb[0].mxu0 }
 0x1ae   : > { %v356_v14 = vadd.f32 %v355_v13, %v315_v12  ;;  %v519_v15 = vpop.f32.mrb[1].mxu0 }
 0x1af   : > { %v358_v16 = vpop.f32.mrb[2].mxu0 }
 0x1b0   : > { %361 = vst [vmem:[%s278_s0] sm:$0xff] %v356_v14  ;;  %v520_v17 = vpop.f32.mrb[3].mxu0 }
 0x1b1   : > { %673 = shalt.err (!%p670_p11)
}
 0x1b2   : > { %s674_s14 = scalar_lea.hbm %s977_s12, 128  ;;  %s678_s25 = scalar_lea.hbm %s1030_s4, 256 }
 0x1b3   : > { %p675_p5 = scmp.ne.s32.totalorder %s977_s12, %s674_s14  ;;  %p679_p3 = scmp.lt.u32.totalorder %s977_s12, %s1030_s4 }
 0x1b4   : > { %p680_p4 = scmp.lt.u32.totalorder %s678_s25, %s674_s14  ;;  %p682_p0 = scmp.lt.u32.totalorder %s674_s14, %s977_s12 }
 0x1b5   : > { %p676_p10 = pnand %p675_p5, %p1046_p2 }
 0x1b6   : > { %p681_p8 = por %p680_p4, %p679_p3 }
 0x1b7   : > { %p677_p1 = pneg %p676_p10 }
 0x1b8   : > { %p683_p12 = por %p682_p0, %p681_p8 }
 0x1ba   : > { %p684_p13 = pnand %p683_p12, %p677_p1 }
 0x1bc   : > { %687 = shalt.err (!%p684_p13)
}
 0x1bd   : > { %525 = dma.vmem_to_hbm [thread:$0]  (%p1046_p2), %s979_s6, 128, %s977_s12, %s363_s13  }
 0x1be PF: > { %s389_s27 = sand.u32 1, %s726_s15   ;;  %p1047_p6 = scmp.ne.s32.totalorder %s1040_s30, 0 }
 0x1bf   : > { %p1048_p7 = scmp.ge.s32.totalorder %s746_s20, 2  ;;  %s390_s10 = scalar_lea.sflag [#allocation4], %s389_s27 }
 0x1c1   : > { %p535_p9 = pnand %p1048_p7, %p1047_p6 }
 0x1c3   : > { %721 = dma.done.wait (!%p535_p9), %s390_s10, 128  }
 0x1c4   : > { %723 = vsyncadd (!%p535_p9), %s390_s10, 4294967168  ;;  %s23_s20 = sadd.s32 1, %s746_s20   ;;  %s1049_s28 = sld [smem:[#allocation11_spill]] }
 0x1c5   : > { %p20_p11 = scmp.ge.s32.totalorder %s23_s20, 4   ;;  %s1050_s15 = smov %s730_s16 }
 0x1c6   : > { %s1051_s16 = smov %s734_s17  ;;  %s1052_s17 = smov %s840_s29 }
 0x1c7   : > { %s1053_s18 = smov %s742_s19  ;;  %22 = sbr.rel (!%p20_p11) target bundleno = 10 (0xa), region = 94 }
 0x1ca   : > { %s1054_s19 = smov %s1049_s28 }
 0x1ce   :  { %395 = vsyncpa [#allocation3], 1 }
 0x1cf   :  { %397 = vsyncpa [#allocation3 + $0x1], 1 }
 0x1d0   :  { %398 = vsyncpa [#allocation6], 1 }
 0x1d1   :  { %400 = vsyncpa [#allocation6 + $0x1], 1 }
 0x1d2   :  { %401 = vsyncpa [#allocation4], 1 }
 0x1d3   :  { %403 = vsyncpa [#allocation4 + $0x1], 1 }

</bundles_post_ra>
